<compile_context>
chip_gen: v7x
topology: tpu7x:2x2x1
jax: 0.10.0
libtpu: 0.0.40
codegen_flags: <defaults>
</compile_context>

<pallas_src>
import functools

import jax
import jax.numpy as jnp
from jax import lax
from jax.experimental import pallas as pl
from jax.experimental.pallas import tpu as pltpu


def _round_up(v: int, m: int) -> int:
    return ((v + m - 1) // m) * m


# --------------------------------------------------------------------------- #
# Small-input fast path: whole [N, D] matrix as one VMEM-resident block.
# --------------------------------------------------------------------------- #
def _small_kernel(x_ref, o_ref, *, mode: str, scale: float):
    x = x_ref[...].astype(jnp.float32)
    col_mean = jnp.mean(x, axis=0, keepdims=True)             # (1, D)

    if mode == "PN":
        xc = x - col_mean
        row_sq = jnp.sum(xc * xc, axis=1, keepdims=True)      # (N, 1)
        inv = scale * lax.rsqrt(1e-06 + jnp.mean(row_sq))     # scalar, scale fused
        out = xc * inv
    elif mode == "PN-SI":
        xc = x - col_mean
        inv_row = scale * lax.rsqrt(
            1e-06 + jnp.sum(xc * xc, axis=1, keepdims=True))  # (N, 1)
        out = xc * inv_row
    else:  # "PN-SCS"
        inv_row = scale * lax.rsqrt(
            1e-06 + jnp.sum(x * x, axis=1, keepdims=True))    # (N, 1)
        out = x * inv_row - col_mean

    o_ref[...] = out.astype(o_ref.dtype)


def _pairnorm_small(x, mode: str, scale: float):
    kernel = functools.partial(_small_kernel, mode=mode, scale=scale)
    return pl.pallas_call(
        kernel,
        out_shape=jax.ShapeDtypeStruct(x.shape, x.dtype),
        in_specs=[pl.BlockSpec(memory_space=pltpu.MemorySpace.VMEM)],
        out_specs=pl.BlockSpec(memory_space=pltpu.MemorySpace.VMEM),
    )(x)


# --------------------------------------------------------------------------- #
# Tiled path, pass 1: column sums (+ sum(x^2) for 'PN'), finalize fused into
# the last grid step (col_mean and the fused scale*rsqrt scalar for 'PN').
# --------------------------------------------------------------------------- #
def _reduce_kernel(x_ref, *refs, n_rows: int, n_true: int, r: int,
                   scale: float, need_var: bool):
    if need_var:
        cm_ref, stat_ref, cs_acc, sq_acc = refs
    else:
        cm_ref, cs_acc = refs
        stat_ref = None
        sq_acc = None

    i = pl.program_id(0)

    @pl.when(i == 0)
    def _():
        cs_acc[...] = jnp.zeros_like(cs_acc)
        if need_var:
            sq_acc[...] = jnp.zeros_like(sq_acc)

    x = x_ref[...].astype(jnp.float32)
    bn, dw = x.shape

    # Ragged last block: zero out rows past the true row count (garbage rows
    # from an out-of-bounds input block must not pollute the statistics).
    if n_rows % bn != 0:
        row = lax.broadcasted_iota(jnp.int32, (bn, 1), 0) + i * bn
        x = jnp.where(row < n_rows, x, 0.0)

    # Fold the tile into (bn//8, 8, dw) and sum the leading axis: plain VPU
    # vreg adds.  The 8-row cross-sublane reduce happens once, at finalize.
    xg = x.reshape(bn // 8, 8, dw)
    cs_acc[...] += jnp.sum(xg, axis=0)
    if need_var:
        sq_acc[...] += jnp.sum(xg * xg, axis=0)

    @pl.when(i == pl.num_programs(0) - 1)
    def _():
        d = dw // r
        cs = cs_acc[...]                              # (8, dw)
        # Combine the r lane groups of the folded layout (static, r <= 16).
        col = cs[:, 0:d]
        for g in range(1, r):
            col = col + cs[:, g * d:(g + 1) * d]
        col_mean = jnp.sum(col, axis=0, keepdims=True) * (1.0 / n_true)  # (1,D)
        cm_ref[...] = col_mean
        if need_var:
            # mean_i ||x_i - mu||^2 == sum_i ||x_i||^2 / N - ||mu||^2 (exact
            # identity; fine in f32 for activation-scale data, lets pass 1
            # read x only once).
            sq_total = jnp.sum(sq_acc[...])
            var = jnp.maximum(
                sq_total * (1.0 / n_true) - jnp.sum(col_mean * col_mean), 0.0)
            stat_ref[...] = jnp.reshape(
                scale * lax.rsqrt(1e-06 + var), (1, 1))


# --------------------------------------------------------------------------- #
# Tiled path, pass 2: per-tile apply kernels (rsqrt + multiply, scale fused).
# --------------------------------------------------------------------------- #
def _apply_pn_kernel(x_ref, cm_ref, inv_ref, o_ref):
    inv = inv_ref[0, 0]                                       # scalar from SMEM
    x = x_ref[...].astype(jnp.float32)
    o_ref[...] = ((x - cm_ref[...]) * inv).astype(o_ref.dtype)


def _apply_pnsi_kernel(x_ref, cm_ref, o_ref, *, scale: float):
    x = x_ref[...].astype(jnp.float32)
    xc = x - cm_ref[...]
    inv_row = scale * lax.rsqrt(
        1e-06 + jnp.sum(xc * xc, axis=1, keepdims=True))
    o_ref[...] = (xc * inv_row).astype(o_ref.dtype)


def _apply_pnscs_kernel(x_ref, cm_ref, o_ref, *, scale: float):
    x = x_ref[...].astype(jnp.float32)
    inv_row = scale * lax.rsqrt(
        1e-06 + jnp.sum(x * x, axis=1, keepdims=True))
    o_ref[...] = (x * inv_row - cm_ref[...]).astype(o_ref.dtype)


def _pairnorm_tiled(x, mode: str, scale: float, block_n: int):
    N, D = x.shape
    out_dtype = x.dtype
    need_var = (mode == "PN")

    # Lane-dense fold: pack r node rows into the 128-wide lane axis when it is
    # a free contiguous reshape (no padding copy needed).
    r = 128 // D if (D < 128 and 128 % D == 0 and N % (128 // D) == 0) else 1
    dw = D * r
    rows = N // r
    xw = x.reshape(rows, dw) if r > 1 else x

    # ---- pass 1: global reductions with fused finalize -----------------------
    bn1 = max(8, ((block_n // r) // 8) * 8)
    bn1 = min(bn1, _round_up(rows, 8))
    grid1 = pl.cdiv(rows, bn1)

    reduce_kern = functools.partial(
        _reduce_kernel, n_rows=rows, n_true=N, r=r, scale=scale,
        need_var=need_var)
    cm_shape = jax.ShapeDtypeStruct((1, D), jnp.float32)
    cm_spec = pl.BlockSpec((1, D), lambda i: (0, 0))
    if need_var:
        out_shape = (cm_shape, jax.ShapeDtypeStruct((1, 1), jnp.float32))
        out_specs = (cm_spec, pl.BlockSpec((1, 1), lambda i: (0, 0)))
        scratch = [pltpu.VMEM((8, dw), jnp.float32),
                   pltpu.VMEM((8, dw), jnp.float32)]
    else:
        out_shape = cm_shape
        out_specs = cm_spec
        scratch = [pltpu.VMEM((8, dw), jnp.float32)]

    res = pl.pallas_call(
        reduce_kern,
        out_shape=out_shape,
        grid=(grid1,),
        in_specs=[pl.BlockSpec((bn1, dw), lambda i: (i, 0))],
        out_specs=out_specs,
        scratch_shapes=scratch,
        compiler_params=pltpu.CompilerParams(
            dimension_semantics=("arbitrary",)),
    )(xw)
    if need_var:
        col_mean, inv = res
    else:
        col_mean = res

    # ---- pass 2: apply -------------------------------------------------------
    if mode == "PN":
        bn2 = max(8, ((block_n // r) // 8) * 8)
        bn2 = min(bn2, _round_up(rows, 8))
        cm_w = jnp.tile(col_mean, (1, r)) if r > 1 else col_mean
        out = pl.pallas_call(
            _apply_pn_kernel,
            out_shape=jax.ShapeDtypeStruct((rows, dw), out_dtype),
            grid=(pl.cdiv(rows, bn2),),
            in_specs=[pl.BlockSpec((bn2, dw), lambda i: (i, 0)),
                      pl.BlockSpec((1, dw), lambda i: (0, 0)),
                      pl.BlockSpec(memory_space=pltpu.MemorySpace.SMEM)],
            out_specs=pl.BlockSpec((bn2, dw), lambda i: (i, 0)),
            compiler_params=pltpu.CompilerParams(
                dimension_semantics=("parallel",)),
        )(xw, cm_w, inv)
        return out.reshape(N, D) if r > 1 else out

    # PN-SI / PN-SCS need per-node row norms -> keep the original row layout.
    bn2 = max(8, (block_n // 8) * 8)
    bn2 = min(bn2, _round_up(N, 8))
    kern = functools.partial(
        _apply_pnsi_kernel if mode == "PN-SI" else _apply_pnscs_kernel,
        scale=scale)
    out = pl.pallas_call(
        kern,
        out_shape=jax.ShapeDtypeStruct((N, D), out_dtype),
        grid=(pl.cdiv(N, bn2),),
        in_specs=[pl.BlockSpec((bn2, D), lambda i: (i, 0)),
                  pl.BlockSpec((1, D), lambda i: (0, 0))],
        out_specs=pl.BlockSpec((bn2, D), lambda i: (i, 0)),
        compiler_params=pltpu.CompilerParams(
            dimension_semantics=("parallel",)),
    )(x, col_mean)
    return out


# --------------------------------------------------------------------------- #
# Public wrapper matching PairNorm.forward (PairNorm has no parameters).
# --------------------------------------------------------------------------- #
def pairnorm(x, mode: str = "PN", scale: float = 1.0, block_n=None):
    assert mode in ["None", "PN", "PN-SI", "PN-SCS"]
    if mode == "None":
        return x
    assert x.ndim == 2, "PairNorm expects a 2-D node-feature matrix [N, D]"
    N, D = x.shape

    if block_n is None:
        # Tiny inputs: one fused launch beats a two-pass pipeline (per-call
        # overhead + DMA latency dominate at a few KiB of data).  Budget the
        # lane-padded (>=128-wide) VMEM footprint, not the raw bytes.
        if N * max(D, 128) * 4 <= (512 << 10):
            return _pairnorm_small(x, mode, float(scale))
        block_n = 512

    # Conservative VMEM budget (~8 MiB of tile buffers incl. double-buffering)
    # so the same tiling fits v5e's 16 MiB scoped default and v7x's 64 MiB
    # physical VMEM without vmem_limit_bytes overrides.
    block_n = max(8, (int(block_n) // 8) * 8)
    while block_n > 8 and 4 * block_n * max(D, 128) * 4 > (8 << 20):
        block_n //= 2
    return _pairnorm_tiled(x, mode, float(scale), block_n)


# --------------------------------------------------------------------------- #
# Pure-JAX reference mirroring the PyTorch code exactly.
# --------------------------------------------------------------------------- #
def _pairnorm_ref(x, mode: str = "PN", scale: float = 1.0):
    if mode == "None":
        return x
    col_mean = x.mean(axis=0)
    if mode == "PN":
        x = x - col_mean
        rownorm_mean = jnp.sqrt(1e-06 + (x ** 2).sum(axis=1).mean())
        x = scale * x / rownorm_mean
    if mode == "PN-SI":
        x = x - col_mean
        rownorm_individual = jnp.sqrt(
            1e-06 + (x ** 2).sum(axis=1, keepdims=True))
        x = scale * x / rownorm_individual
    if mode == "PN-SCS":
        rownorm_individual = jnp.sqrt(
            1e-06 + (x ** 2).sum(axis=1, keepdims=True))
        x = scale * x / rownorm_individual - col_mean
    return x


if __name__ == "__main__":
    key = jax.random.PRNGKey(0)
    failures = []

    # (shape, block_n, scale):
    #   - tiny fast path (single fused kernel),
    #   - tiled + lane-dense fold (D=32, r=4, N divisible by r -> free reshape),
    #   - tiled with ragged grid + in-kernel row masking (N=250, no fold),
    #   - tiled wide-feature path (D=256, no fold).
    configs = [((64, 32), None, 1.0),
               ((1000, 32), 128, 1.7),
               ((250, 32), 64, 1.3),
               ((512, 256), 128, 0.5)]

    for (shape, block_n, scale) in configs:
        key, sub = jax.random.split(key)
        x = jax.random.normal(sub, shape, dtype=jnp.float32)
        for mode in ["PN", "PN-SI", "PN-SCS"]:
            out = jax.block_until_ready(
                pairnorm(x, mode=mode, scale=scale, block_n=block_n))
            ref = _pairnorm_ref(x, mode=mode, scale=scale)
            ok = (out.shape == ref.shape) and bool(
                jnp.allclose(out, ref, atol=1e-4, rtol=1e-4))
            if not ok:
                err = (float(jnp.max(jnp.abs(out - ref)))
                       if out.shape == ref.shape else float("nan"))
                failures.append(
                    f"shape={shape} block_n={block_n} mode={mode}: "
                    f"max abs err {err:.3e}")

    # 'None' mode is a passthrough.
    x0 = jax.random.normal(jax.random.PRNGKey(1), (64, 32), dtype=jnp.float32)
    if not jnp.array_equal(pairnorm(x0, mode="None"), x0):
        failures.append("mode='None' is not a passthrough")

    if failures:
        for msg in failures:
            print("MISMATCH:", msg)
    else:
        print("KERNEL_OK")
</pallas_src>

<mosaic_0001>
module attributes {stable_mosaic.version = 11 : i64} {
  func.func @_small_kernel(%arg0: memref<64x32xf32, #tpu.memory_space<vmem>>, %arg1: memref<64x32xf32, #tpu.memory_space<vmem>>) attributes {dimension_semantics = [], scalar_prefetch = 0 : i64, scratch_operands = 0 : i64, tpu.core_type = #tpu.core_type<tc>} {
    %c0 = arith.constant 0 : index
    %c0_0 = arith.constant 0 : index
    %0 = vector.load %arg0[%c0, %c0_0] : memref<64x32xf32, #tpu.memory_space<vmem>>, vector<64x32xf32>
    %cst = arith.constant dense<0.000000e+00> : vector<32xf32>
    %1 = vector.multi_reduction <add>, %0, %cst [0] : vector<64x32xf32> to vector<32xf32>
    %2 = vector.shape_cast %1 : vector<32xf32> to vector<1x32xf32>
    %cst_1 = arith.constant 6.400000e+01 : f32
    %3 = vector.broadcast %cst_1 : f32 to vector<1x32xf32>
    %4 = arith.divf %2, %3 : vector<1x32xf32>
    %5 = vector.broadcast %4 : vector<1x32xf32> to vector<64x32xf32>
    %6 = arith.subf %0, %5 : vector<64x32xf32>
    %7 = arith.mulf %6, %6 : vector<64x32xf32>
    %cst_2 = arith.constant dense<0.000000e+00> : vector<64xf32>
    %8 = vector.multi_reduction <add>, %7, %cst_2 [1] : vector<64x32xf32> to vector<64xf32>
    %9 = vector.shape_cast %8 : vector<64xf32> to vector<64x1xf32>
    %10 = vector.shape_cast %9 : vector<64x1xf32> to vector<1x64x1xf32>
    %cst_3 = arith.constant dense<0.000000e+00> : vector<1xf32>
    %11 = vector.multi_reduction <add>, %10, %cst_3 [1, 2] : vector<1x64x1xf32> to vector<1xf32>
    %12 = vector.shape_cast %11 : vector<1xf32> to vector<1x1x1xf32>
    %13 = vector.extract %12[0, 0, 0] : f32 from vector<1x1x1xf32>
    %cst_4 = arith.constant 6.400000e+01 : f32
    %14 = arith.divf %13, %cst_4 : f32
    %cst_5 = arith.constant 9.99999997E-7 : f32
    %15 = arith.addf %cst_5, %14 : f32
    %16 = math.rsqrt %15 : f32
    %cst_6 = arith.constant 1.000000e+00 : f32
    %17 = arith.mulf %cst_6, %16 : f32
    %18 = vector.broadcast %17 : f32 to vector<64x32xf32>
    %19 = arith.mulf %6, %18 : vector<64x32xf32>
    %c0_7 = arith.constant 0 : index
    %c0_8 = arith.constant 0 : index
    %20 = vector.load %arg1[%c0_7, %c0_8] : memref<64x32xf32, #tpu.memory_space<vmem>>, vector<64x32xf32>
    tpu.vector_store %arg1[%c0_7, %c0_8], %19 {strides = array<i32>} : memref<64x32xf32, #tpu.memory_space<vmem>>, vector<64x32xf32>,
    return
  }
}

</mosaic_0001>

<bundles_post_ra>
// kernel: tpu_custom_call.1
= control target key start
LH: loop header
LB: loop body
LE: loop exit
PB: predicated region body
PF: predicated region fallthrough
CT: control target
= control target key end

     0   :  { %vm16_vm0 = vcmask 261120   ;;  %vm80_vm1 = vcmask 7168   ;;  %s269_s0 = inlined_call_operand.vmem [shape: f32[64,32], index: 0, kind: input, shape index: {}]   ;;  %s270_s1 = inlined_call_operand.vmem [shape: f32[64,32], index: 1, kind: output, shape index: {}]  }
   0x1   :  { %v8_v0 = vld [vmem:[%s269_s0] sm:$0xff]  ;;  %v9_v1 = vld [vmem:[%s269_s0 + $0x8] sm:$0xff]  ;;  %v10_v2 = vld [vmem:[%s269_s0 + $0x10] sm:$0xff] }
   0x2   :  { %v11_v3 = vld [vmem:[%s269_s0 + $0x18] sm:$0xff]  ;;  %v17_v4 = vsel %vm16_vm0, %v8_v0, 0.0  ;;  %v18_v5 = vsel %vm16_vm0, %v9_v1, 0.0  ;;  %v20_v6 = vsel %vm16_vm0, %v10_v2, 0.0  ;;  %v12_v7 = vld [vmem:[%s269_s0 + $0x20] sm:$0xff]  ;;  %v13_v10 = vld [vmem:[%s269_s0 + $0x28] sm:$0xff] }
   0x3   :  { %v19_v8 = vadd.f32 %v18_v5, %v17_v4  ;;  %v22_v9 = vsel %vm16_vm0, %v11_v3, 0.0  ;;  %v24_v12 = vsel %vm16_vm0, %v12_v7, 0.0  ;;  %v14_v13 = vld [vmem:[%s269_s0 + $0x30] sm:$0xff]  ;;  %v26_v15 = vsel %vm16_vm0, %v13_v10, 0.0  ;;  %v15_v16 = vld [vmem:[%s269_s0 + $0x38] sm:$0xff] }
   0x4   :  { %v28_v18 = vsel %vm16_vm0, %v14_v13, 0.0  ;;  %v30_v20 = vsel %vm16_vm0, %v15_v16, 0.0 }
   0x5   :  { %v21_v11 = vadd.f32 %v20_v6, %v19_v8 }
   0x7   :  { %v23_v14 = vadd.f32 %v22_v9, %v21_v11 }
   0x9   :  { %v25_v17 = vadd.f32 %v24_v12, %v23_v14 }
   0xb   :  { %v27_v19 = vadd.f32 %v26_v15, %v25_v17 }
   0xd   :  { %v29_v21 = vadd.f32 %v28_v18, %v27_v19 }
   0xf   :  { %v31_v22 = vadd.f32 %v30_v20, %v29_v21 }
  0x11   :  { %v32_v23 = vrot.slane %v31_v22, 4 }
  0x13   :  { %v33_v24 = vadd.f32 %v32_v23, %v31_v22 }
  0x15   :  { %v34_v25 = vrot.slane %v33_v24, 2 }
  0x17   :  { %v35_v26 = vadd.f32 %v34_v25, %v33_v24 }
  0x19   :  { %v36_v27 = vrot.slane %v35_v26, 1 }
  0x1b   :  { %v37_v28 = vadd.f32 %v36_v27, %v35_v26 }
  0x1d   :  { %v39_v29 = vmul.f32 0.015625, %v37_v28 }
  0x1f   :  { %v181_v30 = vsub.f32 %v8_v0, %v39_v29  ;;  %v183_v31 = vsub.f32 %v10_v2, %v39_v29  ;;  %v185_v32 = vsub.f32 %v9_v1, %v39_v29  ;;  %v187_v33 = vsub.f32 %v11_v3, %v39_v29 }
  0x20   :  { %v189_v34 = vsub.f32 %v12_v7, %v39_v29  ;;  %v191_v35 = vsub.f32 %v13_v10, %v39_v29  ;;  %v203_v42 = vsub.f32 %v14_v13, %v39_v29  ;;  %v205_v43 = vsub.f32 %v15_v16, %v39_v29 }
  0x21   :  { %v48_v36 = vmul.f32 %v181_v30, %v181_v30  ;;  %v50_v37 = vmul.f32 %v183_v31, %v183_v31  ;;  %v49_v38 = vmul.f32 %v185_v32, %v185_v32  ;;  %v51_v39 = vmul.f32 %v187_v33, %v187_v33 }
  0x22   :  { %v52_v46 = vmul.f32 %v189_v34, %v189_v34  ;;  %v53_v47 = vmul.f32 %v191_v35, %v191_v35  ;;  %v54_v50 = vmul.f32 %v203_v42, %v203_v42  ;;  %v55_v51 = vmul.f32 %v205_v43, %v205_v43 }
  0x23   :  { %v56_v40 = vsel %vm16_vm0, %v48_v36, 0.0  ;;  %v62_v41 = vsel %vm16_vm0, %v50_v37, 0.0  ;;  %v59_v44 = vsel %vm16_vm0, %v49_v38, 0.0  ;;  %v65_v45 = vsel %vm16_vm0, %v51_v39, 0.0 }
  0x24   :  { %57 = vadd.xlane.f32.xlu0 %v56_v40  ;;  %63 = vadd.xlane.f32.xlu1 %v62_v41  ;;  %v68_v48 = vsel %vm16_vm0, %v52_v46, 0.0  ;;  %v71_v49 = vsel %vm16_vm0, %v53_v47, 0.0  ;;  %v74_v52 = vsel %vm16_vm0, %v54_v50, 0.0  ;;  %v77_v53 = vsel %vm16_vm0, %v55_v51, 0.0 }
  0x28   :  { %60 = vadd.xlane.f32.xlu0 %v59_v44  ;;  %66 = vadd.xlane.f32.xlu1 %v65_v45 }
  0x2c   :  { %69 = vadd.xlane.f32.xlu0 %v68_v48  ;;  %72 = vadd.xlane.f32.xlu1 %v71_v49 }
  0x30   :  { %75 = vadd.xlane.f32.xlu0 %v74_v52  ;;  %78 = vadd.xlane.f32.xlu1 %v77_v53 }
  0xb1   :  { %v58_v54 = vpop.xlane.xlu0 %57  ;;  %v64_v55 = vpop.xlane.xlu1 %63 }
  0xb2   :  { %v81_v58 = vsel %vm80_vm1, %v58_v54, 0.0  ;;  %v84_v61 = vsel %vm80_vm1, %v64_v55, 0.0 }
  0xb5   :  { %v61_v56 = vpop.xlane.xlu0 %60  ;;  %v67_v57 = vpop.xlane.xlu1 %66 }
  0xb6   :  { %v82_v59 = vsel %vm80_vm1, %v61_v56, 0.0  ;;  %v86_v62 = vsel %vm80_vm1, %v67_v57, 0.0 }
  0xb7   :  { %v83_v60 = vadd.f32 %v82_v59, %v81_v58 }
  0xb9   :  { %v85_v63 = vadd.f32 %v84_v61, %v83_v60  ;;  %v70_v0 = vpop.xlane.xlu0 %69  ;;  %v73_v1 = vpop.xlane.xlu1 %72 }
  0xba   :  { %v88_v2 = vsel %vm80_vm1, %v70_v0, 0.0  ;;  %v90_v4 = vsel %vm80_vm1, %v73_v1, 0.0 }
  0xbb   :  { %v87_v3 = vadd.f32 %v86_v62, %v85_v63 }
  0xbd   :  { %v89_v5 = vadd.f32 %v88_v2, %v87_v3  ;;  %v76_v6 = vpop.xlane.xlu0 %75  ;;  %v79_v7 = vpop.xlane.xlu1 %78 }
  0xbe   :  { %v92_v8 = vsel %vm80_vm1, %v76_v6, 0.0  ;;  %v94_v10 = vsel %vm80_vm1, %v79_v7, 0.0 }
  0xbf   :  { %v91_v9 = vadd.f32 %v90_v4, %v89_v5 }
  0xc1   :  { %v93_v11 = vadd.f32 %v92_v8, %v91_v9 }
  0xc3   :  { %v95_v12 = vadd.f32 %v94_v10, %v93_v11 }
  0xc5   :  { %96 = vadd.xlane.f32.xlu0 %v95_v12 }
 0x152   :  { %v97_v13 = vpop.xlane.xlu0 %96 }
 0x153   :  { %v98_v14 = vrot.slane %v97_v13, 4 }
 0x155   :  { %v99_v15 = vadd.f32 %v98_v14, %v97_v13 }
 0x157   :  { %v100_v16 = vrot.slane %v99_v15, 2 }
 0x159   :  { %v101_v17 = vadd.f32 %v100_v16, %v99_v15 }
 0x15b   :  { %v102_v18 = vrot.slane %v101_v17, 1 }
 0x15d   :  { %v103_v19 = vadd.f32 %v102_v18, %v101_v17 }
 0x15f   :  { %133 = vpush %v103_v19 }
 0x190   :  { %s134_s0 = spop %133 }
 0x191   :  { %s107_s22 = smul.f32 0.015625, %s134_s0 }
 0x193   :  { %s108_s23 = sadd.f32 1e-06, %s107_s22 }
 0x195   :  { %v109_v20 = vstv %s108_s23 }
 0x196   :  { %137 = vrsqrt.f32 %v109_v20 }
 0x1a0   :  { %v138_v21 = vpop.eup %137 }
 0x1a1   :  { %135 = vpush %v138_v21 }
 0x1d2   :  { %s136_s24 = spop %135 }
 0x1d3   :  { %v112_v22 = vstv %s136_s24 }
 0x1d4   :  { %v113_v23 = vmul.f32 %v112_v22, %v181_v30  ;;  %v114_v24 = vmul.f32 %v112_v22, %v185_v32  ;;  %v115_v25 = vmul.f32 %v112_v22, %v183_v31  ;;  %v116_v26 = vmul.f32 %v112_v22, %v187_v33 }
 0x1d5   :  { %v117_v27 = vmul.f32 %v112_v22, %v189_v34  ;;  %v118_v28 = vmul.f32 %v112_v22, %v191_v35  ;;  %v119_v29 = vmul.f32 %v112_v22, %v203_v42  ;;  %v120_v36 = vmul.f32 %v112_v22, %v205_v43 }
 0x1d6   :  { %121 = vst.msk [vmem:[%s270_s1] sm:$0xff] %vm16_vm0, %v113_v23  ;;  %122 = vst.msk [vmem:[%s270_s1 + $0x8] sm:$0xff] %vm16_vm0, %v114_v24 }
 0x1d7   :  { %123 = vst.msk [vmem:[%s270_s1 + $0x10] sm:$0xff] %vm16_vm0, %v115_v25  ;;  %124 = vst.msk [vmem:[%s270_s1 + $0x18] sm:$0xff] %vm16_vm0, %v116_v26 }
 0x1d8   :  { %125 = vst.msk [vmem:[%s270_s1 + $0x20] sm:$0xff] %vm16_vm0, %v117_v27  ;;  %126 = vst.msk [vmem:[%s270_s1 + $0x28] sm:$0xff] %vm16_vm0, %v118_v28 }
 0x1d9   :  { %127 = vst.msk [vmem:[%s270_s1 + $0x30] sm:$0xff] %vm16_vm0, %v119_v29  ;;  %128 = vst.msk [vmem:[%s270_s1 + $0x38] sm:$0xff] %vm16_vm0, %v120_v36 }

</bundles_post_ra>
